<compile_context>
chip_gen: v7x
topology: tpu7x:2x2x1
jax: 0.10.0
libtpu: 0.0.40
codegen_flags: <defaults>
</compile_context>

<pallas_src>
import functools
import math

import jax
import jax.numpy as jnp
from jax.experimental import pallas as pl
from jax.experimental.pallas import tpu as pltpu


def _level_geometry(h, w, level):
    """Replicates the padding / kernel arithmetic of the PyTorch module."""
    h_kernel = int(math.ceil(h / level))
    w_kernel = int(math.ceil(w / level))
    w_pad1 = int(math.floor((w_kernel * level - w) / 2))
    w_pad2 = int(math.ceil((w_kernel * level - w) / 2))
    h_pad1 = int(math.floor((h_kernel * level - h) / 2))
    h_pad2 = int(math.ceil((h_kernel * level - h) / 2))
    assert w_pad1 + w_pad2 == w_kernel * level - w
    assert h_pad1 + h_pad2 == h_kernel * level - h
    return h_kernel, w_kernel, h_pad1, h_pad2, w_pad1, w_pad2


def _make_spp_kernel(h, w, levels, pool_type):
    hw = h * w
    is_max = (pool_type == 'max')

    def kernel(x_ref, o_ref):
        # x_ref: (tile_n, h*w) block of x.reshape(bs*c, h*w); o_ref: (sum(l^2), tile_n)
        tile_n = x_ref.shape[0]
        dtype = x_ref.dtype
        combine = jnp.maximum if is_max else jnp.add

        # Single in-VMEM relayout: bs*c onto lanes, spatial onto sublanes.
        xt = jnp.transpose(x_ref[...], (1, 0))               # (h*w, tile_n)

        off = 0
        for level in levels:
            hk, wk, hp1, hp2, wp1, wp2 = _level_geometry(h, w, level)
            l2 = level * level
            if hp1 == 0 and hp2 == 0 and wp1 == 0 and wp2 == 0:
                # Divisible geometry (no padding): bulk reshape + unrolled slab
                # combines -> full (8,128) vreg occupancy, one dense store.
                x4 = xt.reshape(level, hk, w, tile_n)
                rowp = functools.reduce(combine, [x4[:, i] for i in range(hk)])
                r4 = rowp.reshape(level, level, wk, tile_n)
                cells = functools.reduce(combine, [r4[:, :, j] for j in range(wk)])
                out = cells.reshape(l2, tile_n)
                if not is_max:
                    out = out * (1.0 / (hk * wk))
            else:
                # General (zero-padded) geometry: per-window combines from the same
                # VMEM tile; padded zeros participate (max-with-0 / count-include-pad).
                rows = []
                for r_ in range(level):
                    rs, re_ = r_ * hk - hp1, (r_ + 1) * hk - hp1
                    rs_c, re_c = max(rs, 0), min(re_, h)
                    slab = None
                    if re_c > rs_c:
                        slab = functools.reduce(
                            combine,
                            [xt[rr * w:(rr + 1) * w, :] for rr in range(rs_c, re_c)])
                    cells = []
                    for c_ in range(level):
                        cs, ce = c_ * wk - wp1, (c_ + 1) * wk - wp1
                        cs_c, ce_c = max(cs, 0), min(ce, w)
                        if slab is None or ce_c <= cs_c:
                            # Window lies entirely in the zero padding.
                            v = jnp.zeros((1, tile_n), dtype)
                        else:
                            v = functools.reduce(
                                combine,
                                [slab[cc:cc + 1, :] for cc in range(cs_c, ce_c)])
                            n_real = (re_c - rs_c) * (ce_c - cs_c)
                            if is_max and n_real < hk * wk:
                                # Padded zeros participate in the max (reference
                                # semantics).
                                v = jnp.maximum(v, jnp.zeros((1, tile_n), dtype))
                        cells.append(v)
                    rows.append(jnp.concatenate(cells, axis=0))   # (level, tile_n)
                out = jnp.concatenate(rows, axis=0)               # (l2, tile_n)
                if not is_max:
                    out = out * (1.0 / (hk * wk))
            o_ref[off:off + l2, :] = out.astype(dtype)            # one dense store/level
            off += l2

    return kernel


def _pick_tile_n(n, hw, l2_total, itemsize, max_tile=512, budget_bytes=24 << 20):
    """Lane tile over bs*c.

    Multiple of 128, >=2 grid steps when n allows (DMA/compute overlap + megacore
    sharding on v7x), and a double-buffered footprint comfortably under v7x's
    64 MiB VMEM.  On 128-MiB parts (v5e/v6e) budget_bytes/max_tile may be raised.
    """
    if n <= 256:
        return n                        # single (possibly narrow) block
    tile = max_tile
    while tile > 128 and 2 * tile > n:                               # >= 2 grid steps
        tile -= 128
    while tile > 128 and (3 * hw + 2 * l2_total) * tile * itemsize > budget_bytes:
        tile -= 128
    return tile


def spp_layer(x, num_levels=4, pool_type='max'):
    """Pallas implementation of SPPLayer.forward (NCHW input)."""
    if pool_type not in ('max', 'avg'):
        raise RuntimeError('Unknown pooling type: %s, please use "max" or "avg".'
                           % pool_type)

    bs, c, h, w = x.shape
    n = bs * c
    hw = h * w
    levels = [2 ** i for i in range(num_levels)]
    l2_total = sum(l * l for l in levels)
    itemsize = jnp.dtype(x.dtype).itemsize

    tile_n = _pick_tile_n(n, hw, l2_total, itemsize)
    grid = (pl.cdiv(n, tile_n),)

    # Free contiguous view — no HBM copy, contiguous per-block DMA.
    x2 = x.reshape(n, hw)

    kernel = _make_spp_kernel(h, w, levels, pool_type)

    vmem_need = (3 * hw + 2 * l2_total) * tile_n * itemsize + (4 << 20)
    vmem_limit = int(min(max(vmem_need, 16 << 20), 32 << 20))     # v7x-safe cap

    out_t = pl.pallas_call(
        kernel,
        out_shape=jax.ShapeDtypeStruct((l2_total, n), x.dtype),
        grid=grid,
        in_specs=[pl.BlockSpec((tile_n, hw), lambda i: (i, 0))],
        out_specs=pl.BlockSpec((l2_total, tile_n), lambda i: (0, i)),
        compiler_params=pltpu.CompilerParams(
            dimension_semantics=("parallel",),        # shards tiles over v7x's 2 TCs
            vmem_limit_bytes=vmem_limit),
    )(x2)

    # Back to the PyTorch layout: (bs, c * sum(level^2)), levels concatenated in
    # order, each level flattened (c, level, level) row-major.  Cheap: operates on
    # the tiny pooled result only.
    pooled = jnp.transpose(out_t).reshape(bs, c, l2_total)
    outs, off = [], 0
    for level in levels:
        l2 = level * level
        outs.append(pooled[:, :, off:off + l2].reshape(bs, c * l2))
        off += l2
    return jnp.concatenate(outs, axis=-1)


def spp_layer_reference(x, num_levels=4, pool_type='max'):
    """Pure-JAX reference (mirrors the PyTorch forward) for verification."""
    bs, c, h, w = x.shape
    outs = []
    for i in range(num_levels):
        level = 2 ** i
        h_k, w_k, h_p1, h_p2, w_p1, w_p2 = _level_geometry(h, w, level)
        xp = jnp.pad(x, ((0, 0), (0, 0), (h_p1, h_p2), (w_p1, w_p2)),
                     mode="constant", constant_values=0)
        win = xp.reshape(bs, c, level, h_k, level, w_k)
        if pool_type == 'max':
            pooled = jnp.max(win, axis=(3, 5))
        else:
            pooled = jnp.mean(win, axis=(3, 5))
        outs.append(pooled.reshape(bs, -1))
    return jnp.concatenate(outs, axis=-1)


if __name__ == "__main__":
    key = jax.random.PRNGKey(0)
    k1, k2, k3 = jax.random.split(key, 3)

    # 1) Canonical shape (divisible dims -> every level uses the bulk reshape path).
    x1 = jax.random.normal(k1, (2, 4, 16, 16), dtype=jnp.float32)
    o1 = jax.block_until_ready(spp_layer(x1, num_levels=4, pool_type='max'))
    assert o1.shape == (2, 4 * 85), o1.shape
    assert jnp.allclose(o1, spp_layer_reference(x1), atol=1e-5, rtol=1e-5)

    # 2) Non-divisible spatial dims -> exercises zero-padding fallback path.
    x2 = jax.random.normal(k2, (2, 4, 12, 10), dtype=jnp.float32)
    o2 = jax.block_until_ready(spp_layer(x2, num_levels=4, pool_type='max'))
    assert o2.shape == (2, 4 * 85), o2.shape
    assert jnp.allclose(o2, spp_layer_reference(x2), atol=1e-5, rtol=1e-5)

    # 3) Larger channel count -> multi-step grid with a partial last lane tile.
    x3 = jax.random.normal(k3, (2, 150, 16, 16), dtype=jnp.float32)
    o3 = jax.block_until_ready(spp_layer(x3, num_levels=4, pool_type='max'))
    assert o3.shape == (2, 150 * 85), o3.shape
    assert jnp.allclose(o3, spp_layer_reference(x3), atol=1e-5, rtol=1e-5)

    # 4) avg pooling path.
    o4 = jax.block_until_ready(spp_layer(x2, num_levels=4, pool_type='avg'))
    assert jnp.allclose(o4, spp_layer_reference(x2, pool_type='avg'),
                        atol=1e-5, rtol=1e-5)

    print("KERNEL_OK")
</pallas_src>

<mosaic_0001>
module attributes {stable_mosaic.version = 11 : i64} {
  func.func @kernel(%arg0: i32, %arg1: memref<8x256xf32, #tpu.memory_space<vmem>>, %arg2: memref<85x8xf32, #tpu.memory_space<vmem>>) attributes {dimension_semantics = [#tpu.dimension_semantics<parallel>], iteration_bounds = array<i64: 1>, scalar_prefetch = 0 : i64, scratch_operands = 0 : i64, tpu.core_type = #tpu.core_type<tc>, window_params = [{transform_indices = @transform_0, window_bounds = array<i64: 8, 256>}, {transform_indices = @transform_1, window_bounds = array<i64: 85, 8>}]} {
    %c0 = arith.constant 0 : index
    %c0_0 = arith.constant 0 : index
    %0 = vector.load %arg1[%c0, %c0_0] : memref<8x256xf32, #tpu.memory_space<vmem>>, vector<8x256xf32>
    %1 = tpu.transpose %0, [1, 0] : vector<8x256xf32> -> vector<256x8xf32>
    %2 = vector.shape_cast %1 : vector<256x8xf32> to vector<1x16x16x8xf32>
    %3 = vector.extract_strided_slice %2 {offsets = [0, 0, 0, 0], sizes = [1, 1, 16, 8], strides = [1, 1, 1, 1]} : vector<1x16x16x8xf32> to vector<1x1x16x8xf32>
    %4 = vector.shape_cast %3 : vector<1x1x16x8xf32> to vector<1x16x8xf32>
    %5 = vector.extract_strided_slice %2 {offsets = [0, 1, 0, 0], sizes = [1, 1, 16, 8], strides = [1, 1, 1, 1]} : vector<1x16x16x8xf32> to vector<1x1x16x8xf32>
    %6 = vector.shape_cast %5 : vector<1x1x16x8xf32> to vector<1x16x8xf32>
    %7 = vector.extract_strided_slice %2 {offsets = [0, 2, 0, 0], sizes = [1, 1, 16, 8], strides = [1, 1, 1, 1]} : vector<1x16x16x8xf32> to vector<1x1x16x8xf32>
    %8 = vector.shape_cast %7 : vector<1x1x16x8xf32> to vector<1x16x8xf32>
    %9 = vector.extract_strided_slice %2 {offsets = [0, 3, 0, 0], sizes = [1, 1, 16, 8], strides = [1, 1, 1, 1]} : vector<1x16x16x8xf32> to vector<1x1x16x8xf32>
    %10 = vector.shape_cast %9 : vector<1x1x16x8xf32> to vector<1x16x8xf32>
    %11 = vector.extract_strided_slice %2 {offsets = [0, 4, 0, 0], sizes = [1, 1, 16, 8], strides = [1, 1, 1, 1]} : vector<1x16x16x8xf32> to vector<1x1x16x8xf32>
    %12 = vector.shape_cast %11 : vector<1x1x16x8xf32> to vector<1x16x8xf32>
    %13 = vector.extract_strided_slice %2 {offsets = [0, 5, 0, 0], sizes = [1, 1, 16, 8], strides = [1, 1, 1, 1]} : vector<1x16x16x8xf32> to vector<1x1x16x8xf32>
    %14 = vector.shape_cast %13 : vector<1x1x16x8xf32> to vector<1x16x8xf32>
    %15 = vector.extract_strided_slice %2 {offsets = [0, 6, 0, 0], sizes = [1, 1, 16, 8], strides = [1, 1, 1, 1]} : vector<1x16x16x8xf32> to vector<1x1x16x8xf32>
    %16 = vector.shape_cast %15 : vector<1x1x16x8xf32> to vector<1x16x8xf32>
    %17 = vector.extract_strided_slice %2 {offsets = [0, 7, 0, 0], sizes = [1, 1, 16, 8], strides = [1, 1, 1, 1]} : vector<1x16x16x8xf32> to vector<1x1x16x8xf32>
    %18 = vector.shape_cast %17 : vector<1x1x16x8xf32> to vector<1x16x8xf32>
    %19 = vector.extract_strided_slice %2 {offsets = [0, 8, 0, 0], sizes = [1, 1, 16, 8], strides = [1, 1, 1, 1]} : vector<1x16x16x8xf32> to vector<1x1x16x8xf32>
    %20 = vector.shape_cast %19 : vector<1x1x16x8xf32> to vector<1x16x8xf32>
    %21 = vector.extract_strided_slice %2 {offsets = [0, 9, 0, 0], sizes = [1, 1, 16, 8], strides = [1, 1, 1, 1]} : vector<1x16x16x8xf32> to vector<1x1x16x8xf32>
    %22 = vector.shape_cast %21 : vector<1x1x16x8xf32> to vector<1x16x8xf32>
    %23 = vector.extract_strided_slice %2 {offsets = [0, 10, 0, 0], sizes = [1, 1, 16, 8], strides = [1, 1, 1, 1]} : vector<1x16x16x8xf32> to vector<1x1x16x8xf32>
    %24 = vector.shape_cast %23 : vector<1x1x16x8xf32> to vector<1x16x8xf32>
    %25 = vector.extract_strided_slice %2 {offsets = [0, 11, 0, 0], sizes = [1, 1, 16, 8], strides = [1, 1, 1, 1]} : vector<1x16x16x8xf32> to vector<1x1x16x8xf32>
    %26 = vector.shape_cast %25 : vector<1x1x16x8xf32> to vector<1x16x8xf32>
    %27 = vector.extract_strided_slice %2 {offsets = [0, 12, 0, 0], sizes = [1, 1, 16, 8], strides = [1, 1, 1, 1]} : vector<1x16x16x8xf32> to vector<1x1x16x8xf32>
    %28 = vector.shape_cast %27 : vector<1x1x16x8xf32> to vector<1x16x8xf32>
    %29 = vector.extract_strided_slice %2 {offsets = [0, 13, 0, 0], sizes = [1, 1, 16, 8], strides = [1, 1, 1, 1]} : vector<1x16x16x8xf32> to vector<1x1x16x8xf32>
    %30 = vector.shape_cast %29 : vector<1x1x16x8xf32> to vector<1x16x8xf32>
    %31 = vector.extract_strided_slice %2 {offsets = [0, 14, 0, 0], sizes = [1, 1, 16, 8], strides = [1, 1, 1, 1]} : vector<1x16x16x8xf32> to vector<1x1x16x8xf32>
    %32 = vector.shape_cast %31 : vector<1x1x16x8xf32> to vector<1x16x8xf32>
    %33 = vector.extract_strided_slice %2 {offsets = [0, 15, 0, 0], sizes = [1, 1, 16, 8], strides = [1, 1, 1, 1]} : vector<1x16x16x8xf32> to vector<1x1x16x8xf32>
    %34 = vector.shape_cast %33 : vector<1x1x16x8xf32> to vector<1x16x8xf32>
    %35 = arith.maximumf %4, %6 : vector<1x16x8xf32>
    %36 = arith.maximumf %35, %8 : vector<1x16x8xf32>
    %37 = arith.maximumf %36, %10 : vector<1x16x8xf32>
    %38 = arith.maximumf %37, %12 : vector<1x16x8xf32>
    %39 = arith.maximumf %38, %14 : vector<1x16x8xf32>
    %40 = arith.maximumf %39, %16 : vector<1x16x8xf32>
    %41 = arith.maximumf %40, %18 : vector<1x16x8xf32>
    %42 = arith.maximumf %41, %20 : vector<1x16x8xf32>
    %43 = arith.maximumf %42, %22 : vector<1x16x8xf32>
    %44 = arith.maximumf %43, %24 : vector<1x16x8xf32>
    %45 = arith.maximumf %44, %26 : vector<1x16x8xf32>
    %46 = arith.maximumf %45, %28 : vector<1x16x8xf32>
    %47 = arith.maximumf %46, %30 : vector<1x16x8xf32>
    %48 = arith.maximumf %47, %32 : vector<1x16x8xf32>
    %49 = arith.maximumf %48, %34 : vector<1x16x8xf32>
    %50 = vector.shape_cast %49 : vector<1x16x8xf32> to vector<1x1x16x8xf32>
    %51 = vector.extract_strided_slice %50 {offsets = [0, 0, 0, 0], sizes = [1, 1, 1, 8], strides = [1, 1, 1, 1]} : vector<1x1x16x8xf32> to vector<1x1x1x8xf32>
    %52 = vector.shape_cast %51 : vector<1x1x1x8xf32> to vector<1x1x8xf32>
    %53 = vector.extract_strided_slice %50 {offsets = [0, 0, 1, 0], sizes = [1, 1, 1, 8], strides = [1, 1, 1, 1]} : vector<1x1x16x8xf32> to vector<1x1x1x8xf32>
    %54 = vector.shape_cast %53 : vector<1x1x1x8xf32> to vector<1x1x8xf32>
    %55 = vector.extract_strided_slice %50 {offsets = [0, 0, 2, 0], sizes = [1, 1, 1, 8], strides = [1, 1, 1, 1]} : vector<1x1x16x8xf32> to vector<1x1x1x8xf32>
    %56 = vector.shape_cast %55 : vector<1x1x1x8xf32> to vector<1x1x8xf32>
    %57 = vector.extract_strided_slice %50 {offsets = [0, 0, 3, 0], sizes = [1, 1, 1, 8], strides = [1, 1, 1, 1]} : vector<1x1x16x8xf32> to vector<1x1x1x8xf32>
    %58 = vector.shape_cast %57 : vector<1x1x1x8xf32> to vector<1x1x8xf32>
    %59 = vector.extract_strided_slice %50 {offsets = [0, 0, 4, 0], sizes = [1, 1, 1, 8], strides = [1, 1, 1, 1]} : vector<1x1x16x8xf32> to vector<1x1x1x8xf32>
    %60 = vector.shape_cast %59 : vector<1x1x1x8xf32> to vector<1x1x8xf32>
    %61 = vector.extract_strided_slice %50 {offsets = [0, 0, 5, 0], sizes = [1, 1, 1, 8], strides = [1, 1, 1, 1]} : vector<1x1x16x8xf32> to vector<1x1x1x8xf32>
    %62 = vector.shape_cast %61 : vector<1x1x1x8xf32> to vector<1x1x8xf32>
    %63 = vector.extract_strided_slice %50 {offsets = [0, 0, 6, 0], sizes = [1, 1, 1, 8], strides = [1, 1, 1, 1]} : vector<1x1x16x8xf32> to vector<1x1x1x8xf32>
    %64 = vector.shape_cast %63 : vector<1x1x1x8xf32> to vector<1x1x8xf32>
    %65 = vector.extract_strided_slice %50 {offsets = [0, 0, 7, 0], sizes = [1, 1, 1, 8], strides = [1, 1, 1, 1]} : vector<1x1x16x8xf32> to vector<1x1x1x8xf32>
    %66 = vector.shape_cast %65 : vector<1x1x1x8xf32> to vector<1x1x8xf32>
    %67 = vector.extract_strided_slice %50 {offsets = [0, 0, 8, 0], sizes = [1, 1, 1, 8], strides = [1, 1, 1, 1]} : vector<1x1x16x8xf32> to vector<1x1x1x8xf32>
    %68 = vector.shape_cast %67 : vector<1x1x1x8xf32> to vector<1x1x8xf32>
    %69 = vector.extract_strided_slice %50 {offsets = [0, 0, 9, 0], sizes = [1, 1, 1, 8], strides = [1, 1, 1, 1]} : vector<1x1x16x8xf32> to vector<1x1x1x8xf32>
    %70 = vector.shape_cast %69 : vector<1x1x1x8xf32> to vector<1x1x8xf32>
    %71 = vector.extract_strided_slice %50 {offsets = [0, 0, 10, 0], sizes = [1, 1, 1, 8], strides = [1, 1, 1, 1]} : vector<1x1x16x8xf32> to vector<1x1x1x8xf32>
    %72 = vector.shape_cast %71 : vector<1x1x1x8xf32> to vector<1x1x8xf32>
    %73 = vector.extract_strided_slice %50 {offsets = [0, 0, 11, 0], sizes = [1, 1, 1, 8], strides = [1, 1, 1, 1]} : vector<1x1x16x8xf32> to vector<1x1x1x8xf32>
    %74 = vector.shape_cast %73 : vector<1x1x1x8xf32> to vector<1x1x8xf32>
    %75 = vector.extract_strided_slice %50 {offsets = [0, 0, 12, 0], sizes = [1, 1, 1, 8], strides = [1, 1, 1, 1]} : vector<1x1x16x8xf32> to vector<1x1x1x8xf32>
    %76 = vector.shape_cast %75 : vector<1x1x1x8xf32> to vector<1x1x8xf32>
    %77 = vector.extract_strided_slice %50 {offsets = [0, 0, 13, 0], sizes = [1, 1, 1, 8], strides = [1, 1, 1, 1]} : vector<1x1x16x8xf32> to vector<1x1x1x8xf32>
    %78 = vector.shape_cast %77 : vector<1x1x1x8xf32> to vector<1x1x8xf32>
    %79 = vector.extract_strided_slice %50 {offsets = [0, 0, 14, 0], sizes = [1, 1, 1, 8], strides = [1, 1, 1, 1]} : vector<1x1x16x8xf32> to vector<1x1x1x8xf32>
    %80 = vector.shape_cast %79 : vector<1x1x1x8xf32> to vector<1x1x8xf32>
    %81 = vector.extract_strided_slice %50 {offsets = [0, 0, 15, 0], sizes = [1, 1, 1, 8], strides = [1, 1, 1, 1]} : vector<1x1x16x8xf32> to vector<1x1x1x8xf32>
    %82 = vector.shape_cast %81 : vector<1x1x1x8xf32> to vector<1x1x8xf32>
    %83 = arith.maximumf %52, %54 : vector<1x1x8xf32>
    %84 = arith.maximumf %83, %56 : vector<1x1x8xf32>
    %85 = arith.maximumf %84, %58 : vector<1x1x8xf32>
    %86 = arith.maximumf %85, %60 : vector<1x1x8xf32>
    %87 = arith.maximumf %86, %62 : vector<1x1x8xf32>
    %88 = arith.maximumf %87, %64 : vector<1x1x8xf32>
    %89 = arith.maximumf %88, %66 : vector<1x1x8xf32>
    %90 = arith.maximumf %89, %68 : vector<1x1x8xf32>
    %91 = arith.maximumf %90, %70 : vector<1x1x8xf32>
    %92 = arith.maximumf %91, %72 : vector<1x1x8xf32>
    %93 = arith.maximumf %92, %74 : vector<1x1x8xf32>
    %94 = arith.maximumf %93, %76 : vector<1x1x8xf32>
    %95 = arith.maximumf %94, %78 : vector<1x1x8xf32>
    %96 = arith.maximumf %95, %80 : vector<1x1x8xf32>
    %97 = arith.maximumf %96, %82 : vector<1x1x8xf32>
    %98 = vector.shape_cast %97 : vector<1x1x8xf32> to vector<1x8xf32>
    %c0_1 = arith.constant 0 : index
    %c0_2 = arith.constant 0 : index
    %99 = vector.load %arg2[%c0_1, %c0_2] : memref<85x8xf32, #tpu.memory_space<vmem>>, vector<1x8xf32>
    tpu.vector_store %arg2[%c0_1, %c0_2], %98 {strides = array<i32>} : memref<85x8xf32, #tpu.memory_space<vmem>>, vector<1x8xf32>,
    %100 = vector.shape_cast %1 : vector<256x8xf32> to vector<2x8x16x8xf32>
    %101 = vector.extract_strided_slice %100 {offsets = [0, 0, 0, 0], sizes = [2, 1, 16, 8], strides = [1, 1, 1, 1]} : vector<2x8x16x8xf32> to vector<2x1x16x8xf32>
    %102 = vector.shape_cast %101 : vector<2x1x16x8xf32> to vector<2x16x8xf32>
    %103 = vector.extract_strided_slice %100 {offsets = [0, 1, 0, 0], sizes = [2, 1, 16, 8], strides = [1, 1, 1, 1]} : vector<2x8x16x8xf32> to vector<2x1x16x8xf32>
    %104 = vector.shape_cast %103 : vector<2x1x16x8xf32> to vector<2x16x8xf32>
    %105 = vector.extract_strided_slice %100 {offsets = [0, 2, 0, 0], sizes = [2, 1, 16, 8], strides = [1, 1, 1, 1]} : vector<2x8x16x8xf32> to vector<2x1x16x8xf32>
    %106 = vector.shape_cast %105 : vector<2x1x16x8xf32> to vector<2x16x8xf32>
    %107 = vector.extract_strided_slice %100 {offsets = [0, 3, 0, 0], sizes = [2, 1, 16, 8], strides = [1, 1, 1, 1]} : vector<2x8x16x8xf32> to vector<2x1x16x8xf32>
    %108 = vector.shape_cast %107 : vector<2x1x16x8xf32> to vector<2x16x8xf32>
    %109 = vector.extract_strided_slice %100 {offsets = [0, 4, 0, 0], sizes = [2, 1, 16, 8], strides = [1, 1, 1, 1]} : vector<2x8x16x8xf32> to vector<2x1x16x8xf32>
    %110 = vector.shape_cast %109 : vector<2x1x16x8xf32> to vector<2x16x8xf32>
    %111 = vector.extract_strided_slice %100 {offsets = [0, 5, 0, 0], sizes = [2, 1, 16, 8], strides = [1, 1, 1, 1]} : vector<2x8x16x8xf32> to vector<2x1x16x8xf32>
    %112 = vector.shape_cast %111 : vector<2x1x16x8xf32> to vector<2x16x8xf32>
    %113 = vector.extract_strided_slice %100 {offsets = [0, 6, 0, 0], sizes = [2, 1, 16, 8], strides = [1, 1, 1, 1]} : vector<2x8x16x8xf32> to vector<2x1x16x8xf32>
    %114 = vector.shape_cast %113 : vector<2x1x16x8xf32> to vector<2x16x8xf32>
    %115 = vector.extract_strided_slice %100 {offsets = [0, 7, 0, 0], sizes = [2, 1, 16, 8], strides = [1, 1, 1, 1]} : vector<2x8x16x8xf32> to vector<2x1x16x8xf32>
    %116 = vector.shape_cast %115 : vector<2x1x16x8xf32> to vector<2x16x8xf32>
    %117 = arith.maximumf %102, %104 : vector<2x16x8xf32>
    %118 = arith.maximumf %117, %106 : vector<2x16x8xf32>
    %119 = arith.maximumf %118, %108 : vector<2x16x8xf32>
    %120 = arith.maximumf %119, %110 : vector<2x16x8xf32>
    %121 = arith.maximumf %120, %112 : vector<2x16x8xf32>
    %122 = arith.maximumf %121, %114 : vector<2x16x8xf32>
    %123 = arith.maximumf %122, %116 : vector<2x16x8xf32>
    %124 = vector.shape_cast %123 : vector<2x16x8xf32> to vector<2x2x8x8xf32>
    %125 = vector.extract_strided_slice %124 {offsets = [0, 0, 0, 0], sizes = [2, 2, 1, 8], strides = [1, 1, 1, 1]} : vector<2x2x8x8xf32> to vector<2x2x1x8xf32>
    %126 = vector.shape_cast %125 : vector<2x2x1x8xf32> to vector<2x2x8xf32>
    %127 = vector.extract_strided_slice %124 {offsets = [0, 0, 1, 0], sizes = [2, 2, 1, 8], strides = [1, 1, 1, 1]} : vector<2x2x8x8xf32> to vector<2x2x1x8xf32>
    %128 = vector.shape_cast %127 : vector<2x2x1x8xf32> to vector<2x2x8xf32>
    %129 = vector.extract_strided_slice %124 {offsets = [0, 0, 2, 0], sizes = [2, 2, 1, 8], strides = [1, 1, 1, 1]} : vector<2x2x8x8xf32> to vector<2x2x1x8xf32>
    %130 = vector.shape_cast %129 : vector<2x2x1x8xf32> to vector<2x2x8xf32>
    %131 = vector.extract_strided_slice %124 {offsets = [0, 0, 3, 0], sizes = [2, 2, 1, 8], strides = [1, 1, 1, 1]} : vector<2x2x8x8xf32> to vector<2x2x1x8xf32>
    %132 = vector.shape_cast %131 : vector<2x2x1x8xf32> to vector<2x2x8xf32>
    %133 = vector.extract_strided_slice %124 {offsets = [0, 0, 4, 0], sizes = [2, 2, 1, 8], strides = [1, 1, 1, 1]} : vector<2x2x8x8xf32> to vector<2x2x1x8xf32>
    %134 = vector.shape_cast %133 : vector<2x2x1x8xf32> to vector<2x2x8xf32>
    %135 = vector.extract_strided_slice %124 {offsets = [0, 0, 5, 0], sizes = [2, 2, 1, 8], strides = [1, 1, 1, 1]} : vector<2x2x8x8xf32> to vector<2x2x1x8xf32>
    %136 = vector.shape_cast %135 : vector<2x2x1x8xf32> to vector<2x2x8xf32>
    %137 = vector.extract_strided_slice %124 {offsets = [0, 0, 6, 0], sizes = [2, 2, 1, 8], strides = [1, 1, 1, 1]} : vector<2x2x8x8xf32> to vector<2x2x1x8xf32>
    %138 = vector.shape_cast %137 : vector<2x2x1x8xf32> to vector<2x2x8xf32>
    %139 = vector.extract_strided_slice %124 {offsets = [0, 0, 7, 0], sizes = [2, 2, 1, 8], strides = [1, 1, 1, 1]} : vector<2x2x8x8xf32> to vector<2x2x1x8xf32>
    %140 = vector.shape_cast %139 : vector<2x2x1x8xf32> to vector<2x2x8xf32>
    %141 = arith.maximumf %126, %128 : vector<2x2x8xf32>
    %142 = arith.maximumf %141, %130 : vector<2x2x8xf32>
    %143 = arith.maximumf %142, %132 : vector<2x2x8xf32>
    %144 = arith.maximumf %143, %134 : vector<2x2x8xf32>
    %145 = arith.maximumf %144, %136 : vector<2x2x8xf32>
    %146 = arith.maximumf %145, %138 : vector<2x2x8xf32>
    %147 = arith.maximumf %146, %140 : vector<2x2x8xf32>
    %148 = vector.shape_cast %147 : vector<2x2x8xf32> to vector<4x8xf32>
    %c1 = arith.constant 1 : index
    %c0_3 = arith.constant 0 : index
    %149 = vector.load %arg2[%c1, %c0_3] : memref<85x8xf32, #tpu.memory_space<vmem>>, vector<4x8xf32>
    tpu.vector_store %arg2[%c1, %c0_3], %148 {strides = array<i32>} : memref<85x8xf32, #tpu.memory_space<vmem>>, vector<4x8xf32>,
    %150 = vector.shape_cast %1 : vector<256x8xf32> to vector<4x4x16x8xf32>
    %151 = vector.extract_strided_slice %150 {offsets = [0, 0, 0, 0], sizes = [4, 1, 16, 8], strides = [1, 1, 1, 1]} : vector<4x4x16x8xf32> to vector<4x1x16x8xf32>
    %152 = vector.shape_cast %151 : vector<4x1x16x8xf32> to vector<4x16x8xf32>
    %153 = vector.extract_strided_slice %150 {offsets = [0, 1, 0, 0], sizes = [4, 1, 16, 8], strides = [1, 1, 1, 1]} : vector<4x4x16x8xf32> to vector<4x1x16x8xf32>
    %154 = vector.shape_cast %153 : vector<4x1x16x8xf32> to vector<4x16x8xf32>
    %155 = vector.extract_strided_slice %150 {offsets = [0, 2, 0, 0], sizes = [4, 1, 16, 8], strides = [1, 1, 1, 1]} : vector<4x4x16x8xf32> to vector<4x1x16x8xf32>
    %156 = vector.shape_cast %155 : vector<4x1x16x8xf32> to vector<4x16x8xf32>
    %157 = vector.extract_strided_slice %150 {offsets = [0, 3, 0, 0], sizes = [4, 1, 16, 8], strides = [1, 1, 1, 1]} : vector<4x4x16x8xf32> to vector<4x1x16x8xf32>
    %158 = vector.shape_cast %157 : vector<4x1x16x8xf32> to vector<4x16x8xf32>
    %159 = arith.maximumf %152, %154 : vector<4x16x8xf32>
    %160 = arith.maximumf %159, %156 : vector<4x16x8xf32>
    %161 = arith.maximumf %160, %158 : vector<4x16x8xf32>
    %162 = vector.shape_cast %161 : vector<4x16x8xf32> to vector<4x4x4x8xf32>
    %163 = vector.extract_strided_slice %162 {offsets = [0, 0, 0, 0], sizes = [4, 4, 1, 8], strides = [1, 1, 1, 1]} : vector<4x4x4x8xf32> to vector<4x4x1x8xf32>
    %164 = vector.shape_cast %163 : vector<4x4x1x8xf32> to vector<4x4x8xf32>
    %165 = vector.extract_strided_slice %162 {offsets = [0, 0, 1, 0], sizes = [4, 4, 1, 8], strides = [1, 1, 1, 1]} : vector<4x4x4x8xf32> to vector<4x4x1x8xf32>
    %166 = vector.shape_cast %165 : vector<4x4x1x8xf32> to vector<4x4x8xf32>
    %167 = vector.extract_strided_slice %162 {offsets = [0, 0, 2, 0], sizes = [4, 4, 1, 8], strides = [1, 1, 1, 1]} : vector<4x4x4x8xf32> to vector<4x4x1x8xf32>
    %168 = vector.shape_cast %167 : vector<4x4x1x8xf32> to vector<4x4x8xf32>
    %169 = vector.extract_strided_slice %162 {offsets = [0, 0, 3, 0], sizes = [4, 4, 1, 8], strides = [1, 1, 1, 1]} : vector<4x4x4x8xf32> to vector<4x4x1x8xf32>
    %170 = vector.shape_cast %169 : vector<4x4x1x8xf32> to vector<4x4x8xf32>
    %171 = arith.maximumf %164, %166 : vector<4x4x8xf32>
    %172 = arith.maximumf %171, %168 : vector<4x4x8xf32>
    %173 = arith.maximumf %172, %170 : vector<4x4x8xf32>
    %174 = vector.shape_cast %173 : vector<4x4x8xf32> to vector<16x8xf32>
    %c5 = arith.constant 5 : index
    %c0_4 = arith.constant 0 : index
    %175 = vector.load %arg2[%c5, %c0_4] : memref<85x8xf32, #tpu.memory_space<vmem>>, vector<16x8xf32>
    tpu.vector_store %arg2[%c5, %c0_4], %174 {strides = array<i32>} : memref<85x8xf32, #tpu.memory_space<vmem>>, vector<16x8xf32>,
    %176 = vector.shape_cast %1 : vector<256x8xf32> to vector<8x2x16x8xf32>
    %177 = vector.extract_strided_slice %176 {offsets = [0, 0, 0, 0], sizes = [8, 1, 16, 8], strides = [1, 1, 1, 1]} : vector<8x2x16x8xf32> to vector<8x1x16x8xf32>
    %178 = vector.shape_cast %177 : vector<8x1x16x8xf32> to vector<8x16x8xf32>
    %179 = vector.extract_strided_slice %176 {offsets = [0, 1, 0, 0], sizes = [8, 1, 16, 8], strides = [1, 1, 1, 1]} : vector<8x2x16x8xf32> to vector<8x1x16x8xf32>
    %180 = vector.shape_cast %179 : vector<8x1x16x8xf32> to vector<8x16x8xf32>
    %181 = arith.maximumf %178, %180 : vector<8x16x8xf32>
    %182 = vector.shape_cast %181 : vector<8x16x8xf32> to vector<8x8x2x8xf32>
    %183 = vector.extract_strided_slice %182 {offsets = [0, 0, 0, 0], sizes = [8, 8, 1, 8], strides = [1, 1, 1, 1]} : vector<8x8x2x8xf32> to vector<8x8x1x8xf32>
    %184 = vector.shape_cast %183 : vector<8x8x1x8xf32> to vector<8x8x8xf32>
    %185 = vector.extract_strided_slice %182 {offsets = [0, 0, 1, 0], sizes = [8, 8, 1, 8], strides = [1, 1, 1, 1]} : vector<8x8x2x8xf32> to vector<8x8x1x8xf32>
    %186 = vector.shape_cast %185 : vector<8x8x1x8xf32> to vector<8x8x8xf32>
    %187 = arith.maximumf %184, %186 : vector<8x8x8xf32>
    %188 = vector.shape_cast %187 : vector<8x8x8xf32> to vector<64x8xf32>
    %c21 = arith.constant 21 : index
    %c0_5 = arith.constant 0 : index
    %189 = vector.load %arg2[%c21, %c0_5] : memref<85x8xf32, #tpu.memory_space<vmem>>, vector<64x8xf32>
    tpu.vector_store %arg2[%c21, %c0_5], %188 {strides = array<i32>} : memref<85x8xf32, #tpu.memory_space<vmem>>, vector<64x8xf32>,
    return
  }
  func.func @transform_0(%arg0: i32) -> (i32, i32) {
    %c0_i32 = arith.constant 0 : i32
    %c0_i32_0 = arith.constant 0 : i32
    return %arg0, %c0_i32 : i32, i32
  }
  func.func @transform_1(%arg0: i32) -> (i32, i32) {
    %c0_i32 = arith.constant 0 : i32
    %c0_i32_0 = arith.constant 0 : i32
    return %c0_i32, %arg0 : i32, i32
  }
}

</mosaic_0001>

<bundles_post_ra>
// kernel: tpu_custom_call.1
= control target key start
LH: loop header
LB: loop body
LE: loop exit
PB: predicated region body
PF: predicated region fallthrough
CT: control target
= control target key end

     0   :  { %6 = vsyncpa [#allocation3], 0  ;;  %s1764_s6 = smov [#allocation2]   ;;  %s2263_s0 = inlined_call_operand.hbm [shape: f32[8,256], index: 0, kind: input, shape index: {}]   ;;  %s2264_s1 = inlined_call_operand.vmem [shape: f32[85,8], index: 1, kind: output, shape index: {}]  }
   0x1   :  { %s13_s7 = sshll.u32 %s1764_s6, 4  ;;  %s1740_s10 = scalar_lea.hbm %s2263_s0, 256  ;;  %s14_s7 = int_to_ptr.vmem [resolvable:$true] %s13_s7 }
   0x2   :  { %p1741_p0 = scmp.ne.s32.totalorder %s2263_s0, %s1740_s10  ;;  %p1744_p1 = scmp.lt.u32.totalorder %s1740_s10, %s2263_s0 }
   0x4   :  { %p1746_p2 = pnand %p1744_p1, %p1741_p0 }
   0x6   :  { %1749 = shalt.err (!%p1746_p2)
}
   0x7   :  { %s1750_s15 = scalar_lea.vmem %s14_s7, 256  ;;  %p1755_p4 = scmp.lt.s32.totalorder %s14_s7, %s14_s7 }
   0x8   :  { %p1751_p3 = scmp.ne.s32.totalorder %s14_s7, %s1750_s15  ;;  %p1756_p5 = scmp.lt.s32.totalorder %s1750_s15, %s1750_s15 }
   0xa   :  { %p1757_p6 = por %p1756_p5, %p1755_p4 }
   0xc   :  { %p1758_p7 = pnand %p1757_p6, %p1751_p3 }
   0xe   :  { %1761 = shalt.err (!%p1758_p7)
}
   0xf   :  { %16 = dma.hbm_to_vmem [thread:$0]  %s2263_s0, 256, %s14_s7, [#allocation3]  }
  0x10   :  { %1762 = dma.done.wait [#allocation3], 256  }
  0x11   :  { %1763 = vsyncadd [#allocation3], 4294967040  ;;  %v20_v0 = vld [vmem:[#allocation2] sm:$0xff]  ;;  %v21_v1 = vld [vmem:[#allocation2 + $0x8] sm:$0xff]  ;;  %v525_v2 = vlaneseq  ;;  %v1765_v3 = vmov 1983009808  }
  0x12   :  { %22 = vxpose.xlu0.b32.start.end [1/1] (short) %v20_v0, 128  ;;  %v638_v4 = vunpack.c.l.s4 %v1765_v3  ;;  %vm270_vm0 = vcmask 1041409   ;;  %vm273_vm1 = vcmask 1042434   ;;  %vm276_vm2 = vcmask 1043459  }
  0x13   :  { %v526_v6 = vshrl.u32 %v525_v2, 7  ;;  %vm592_vm3 = vcmask 1044484   ;;  %vm594_vm4 = vcmask 1045509   ;;  %vm596_vm5 = vcmask 1046534  }
  0x14   :  { %v639_v7 = vunpack.c.0.s8 %v638_v4  ;;  %vm598_vm6 = vcmask 1047559   ;;  %vm609_vm7 = vcmask 64512   ;;  %vm161_vm8 = vcmask 57344  }
  0x15   :  { %v1794_v19 = vsub.s32 0, %v526_v6  ;;  %vm279_vm9 = vcmask 60416  }
  0x16   :  { %v1788_v9 = vsub.s32 %v639_v7, %v526_v6 }
  0x4f   :  { %54 = vxpose.xlu0.b32.start.end [1/1] (short) %v21_v1, 128 }
  0x92   :  { %v38_v5 = vpop.trf.xlu0 }
  0x96   :  { %v39_v8 = vpop.trf.xlu0 }
  0x9a   :  { %v40_v10 = vpop.trf.xlu0 }
  0x9b   :  { %v86_v11 = vmax.f32 %v38_v5, %v40_v10 }
  0x9d   :  { %v636_v12 = vcombine.high %v86_v11, %v86_v11  ;;  %v643_v13 = vrot.slane %v86_v11, %v1788_v9 }
  0x9e   :  { %v41_v14 = vpop.trf.xlu0 }
  0x9f   :  { %v650_v15 = vrot.slane %v636_v12, %v1788_v9  ;;  %v651_v16 = vcombine.high %v643_v13, %v643_v13  ;;  %v1673_v17 = vrot.slane %v643_v13, 9  ;;  %v1792_v18 = vmax.f32 %v39_v8, %v41_v14 }
  0xa1   :  { %v652_v20 = vcombine.high %v650_v15, %v650_v15  ;;  %v1674_v21 = vrot.slane %v651_v16, 9  ;;  %v1675_v22 = vrot.slane %v650_v15, 9  ;;  %v1164_v23 = vmax.f32 %v643_v13, %v1673_v17 }
  0xa2   :  { %v653_v24 = vcombine.high %v1792_v18, %v1792_v18  ;;  %v660_v25 = vrot.slane %v1792_v18, %v1788_v9  ;;  %v42_v26 = vpop.trf.xlu0 }
  0xa3   :  { %v1676_v27 = vrot.slane %v652_v20, 9  ;;  %v1165_v28 = vmax.f32 %v651_v16, %v1674_v21  ;;  %v1166_v29 = vmax.f32 %v650_v15, %v1675_v22  ;;  %v1295_v34 = vrot.slane %v1164_v23, %v1794_v19 }
  0xa4   :  { %v667_v30 = vrot.slane %v653_v24, %v1788_v9  ;;  %v668_v31 = vcombine.high %v660_v25, %v660_v25  ;;  %v1677_v32 = vrot.slane %v660_v25, 9  ;;  %v88_v50 = vmax.f32 %v86_v11, %v42_v26 }
  0xa5   :  { %v1167_v33 = vmax.f32 %v652_v20, %v1676_v27  ;;  %v1299_v35 = vrot.slane %v1165_v28, %v1794_v19  ;;  %v1303_v36 = vrot.slane %v1166_v29, %v1794_v19 }
  0xa6   :  { %v669_v37 = vcombine.high %v667_v30, %v667_v30  ;;  %v1678_v38 = vrot.slane %v668_v31, 9  ;;  %v1679_v39 = vrot.slane %v667_v30, 9  ;;  %v1168_v40 = vmax.f32 %v660_v25, %v1677_v32  ;;  %v43_v41 = vpop.trf.xlu0 }
  0xa7   :  { %v1307_v42 = vrot.slane %v1167_v33, %v1794_v19  ;;  %v1548_v43 = vsel %vm270_vm0, %v1299_v35, %v1295_v34  ;;  %v89_v0 = vmax.f32 %v1792_v18, %v43_v41 }
  0xa8   :  { %v1549_v44 = vsel %vm273_vm1, %v1303_v36, %v1548_v43  ;;  %v1680_v45 = vrot.slane %v669_v37, 9  ;;  %v1169_v46 = vmax.f32 %v668_v31, %v1678_v38  ;;  %v1170_v47 = vmax.f32 %v667_v30, %v1679_v39 }
  0xa9   :  { %v1550_v48 = vsel %vm276_vm2, %v1307_v42, %v1549_v44  ;;  %v1311_v49 = vrot.slane %v1168_v40, %v1794_v19 }
  0xaa   :  { %v1171_v51 = vmax.f32 %v669_v37, %v1680_v45  ;;  %v1315_v52 = vrot.slane %v1169_v46, %v1794_v19  ;;  %v1319_v53 = vrot.slane %v1170_v47, %v1794_v19  ;;  %v44_v54 = vpop.trf.xlu0 }
  0xab   :  { %v1551_v55 = vsel %vm592_vm3, %v1311_v49, %v1550_v48  ;;  %v1812_v56 = vmax.f32 %v88_v50, %v44_v54  ;;  %v612_v57 = vmax.f32 %v42_v26, %v44_v54 }
  0xac   :  { %v1323_v58 = vrot.slane %v1171_v51, %v1794_v19  ;;  %v1552_v59 = vsel %vm594_vm4, %v1315_v52, %v1551_v55 }
  0xad   :  { %v1553_v60 = vsel %vm596_vm5, %v1319_v53, %v1552_v59  ;;  %v301_v61 = vcombine.high %v1812_v56, %v1812_v56  ;;  %v1625_v62 = vrot.slane %v1812_v56, 9  ;;  %v670_v1 = vcombine.high %v612_v57, %v612_v57 }
  0xae   :  { %v1554_v63 = vsel %vm598_vm6, %v1323_v58, %v1553_v60  ;;  %v677_v2 = vrot.slane %v612_v57, %v1788_v9  ;;  %v45_v3 = vpop.trf.xlu0  ;;  %v1641_v6 = vrot.slane %v1812_v56, 10  ;;  %v1657_v7 = vrot.slane %v1812_v56, 11 }
  0xaf   :  { %1612 = vst.msk [vmem:[%s2264_s1 + $0x15] sm:$0xff] %vm609_vm7, %v1554_v63  ;;  %v1626_v4 = vrot.slane %v301_v61, 9  ;;  %v365_v5 = vmax.f32 %v1812_v56, %v1625_v62  ;;  %v684_v8 = vrot.slane %v670_v1, %v1788_v9  ;;  %v1831_v12 = vmax.f32 %v89_v0, %v45_v3 }
  0xb0   :  { %v685_v10 = vcombine.high %v677_v2, %v677_v2  ;;  %v1681_v11 = vrot.slane %v677_v2, 9  ;;  %v1642_v14 = vrot.slane %v301_v61, 10  ;;  %v1658_v16 = vrot.slane %v301_v61, 11 }
  0xb1   :  { %v366_v13 = vmax.f32 %v301_v61, %v1626_v4  ;;  %v429_v15 = vmax.f32 %v365_v5, %v1641_v6  ;;  %v686_v17 = vcombine.high %v684_v8, %v684_v8  ;;  %v1683_v20 = vrot.slane %v684_v8, 9 }
  0xb2   :  { %v1682_v18 = vrot.slane %v685_v10, 9  ;;  %v1172_v21 = vmax.f32 %v677_v2, %v1681_v11  ;;  %v46_v22 = vpop.trf.xlu0  ;;  %v302_v24 = vcombine.high %v1831_v12, %v1831_v12  ;;  %v1627_v25 = vrot.slane %v1831_v12, 9 }
  0xb3   :  { %v430_v23 = vmax.f32 %v366_v13, %v1642_v14  ;;  %v613_v26 = vmax.f32 %v43_v41, %v45_v3  ;;  %v493_v27 = vmax.f32 %v429_v15, %v1657_v7  ;;  %v1684_v28 = vrot.slane %v686_v17, 9 }
  0xb4   :  { %v1173_v29 = vmax.f32 %v685_v10, %v1682_v18  ;;  %v1174_v30 = vmax.f32 %v684_v8, %v1683_v20  ;;  %v1327_v32 = vrot.slane %v1172_v21, %v1794_v19  ;;  %v1628_v33 = vrot.slane %v302_v24, 9 }
  0xb5   :  { %v494_v31 = vmax.f32 %v430_v23, %v1658_v16  ;;  %v367_v34 = vmax.f32 %v1831_v12, %v1627_v25  ;;  %v1175_v35 = vmax.f32 %v686_v17, %v1684_v28  ;;  %v1643_v38 = vrot.slane %v1831_v12, 10 }
  0xb6   :  { %v1331_v36 = vrot.slane %v1173_v29, %v1794_v19  ;;  %v1335_v37 = vrot.slane %v1174_v30, %v1794_v19  ;;  %v47_v39 = vpop.trf.xlu0  ;;  %v368_v41 = vmax.f32 %v302_v24, %v1628_v33  ;;  %v1644_v44 = vrot.slane %v302_v24, 10 }
  0xb7   :  { %v532_v40 = vrot.slane %v494_v31, %v1794_v19  ;;  %v1339_v42 = vrot.slane %v1175_v35, %v1794_v19  ;;  %v431_v45 = vmax.f32 %v367_v34, %v1643_v38  ;;  %v528_v46 = vrot.slane %v493_v27, %v1794_v19 }
  0xb8   :  { %v1555_v43 = vsel %vm270_vm0, %v1331_v36, %v1327_v32  ;;  %v1659_v48 = vrot.slane %v1831_v12, 11  ;;  %v687_v49 = vcombine.high %v613_v26, %v613_v26  ;;  %v432_v50 = vmax.f32 %v368_v41, %v1644_v44 }
  0xb9   :  { %v1556_v47 = vsel %vm273_vm1, %v1335_v37, %v1555_v43  ;;  %v1660_v51 = vrot.slane %v302_v24, 11  ;;  %v694_v52 = vrot.slane %v613_v26, %v1788_v9  ;;  %v92_v53 = vmax.f32 %v1812_v56, %v46_v22 }
  0xba   :  { %v48_v54 = vpop.trf.xlu0  ;;  %v589_v55 = vsel %vm270_vm0, %v532_v40, %v528_v46  ;;  %v1557_v57 = vsel %vm276_vm2, %v1339_v42, %v1556_v47  ;;  %v701_v58 = vrot.slane %v687_v49, %v1788_v9  ;;  %v495_v60 = vmax.f32 %v431_v45, %v1659_v48 }
  0xbb   :  { %v1852_v59 = vmax.f32 %v46_v22, %v48_v54  ;;  %v702_v61 = vcombine.high %v694_v52, %v694_v52  ;;  %v1685_v62 = vrot.slane %v694_v52, 9  ;;  %v1854_v63 = vmax.f32 %v92_v53, %v48_v54 }
  0xbc   :  { %v703_v0 = vcombine.high %v701_v58, %v701_v58  ;;  %v1687_v1 = vrot.slane %v701_v58, 9  ;;  %v496_v3 = vmax.f32 %v432_v50, %v1660_v51  ;;  %v93_v6 = vmax.f32 %v1831_v12, %v47_v39 }
  0xbd   :  { %v704_v2 = vcombine.high %v1852_v59, %v1852_v59  ;;  %v711_v56 = vrot.slane %v1852_v59, %v1788_v9  ;;  %v1686_v4 = vrot.slane %v702_v61, 9  ;;  %v1176_v5 = vmax.f32 %v694_v52, %v1685_v62 }
  0xbe   :  { %v49_v7 = vpop.trf.xlu0  ;;  %v1688_v8 = vrot.slane %v703_v0, 9  ;;  %v1178_v10 = vmax.f32 %v701_v58, %v1687_v1  ;;  %v536_v31 = vrot.slane %v495_v60, %v1794_v19  ;;  %v540_v43 = vrot.slane %v496_v3, %v1794_v19 }
  0xbf   :  { %v718_v11 = vrot.slane %v704_v2, %v1788_v9  ;;  %v719_v13 = vcombine.high %v711_v56, %v711_v56  ;;  %v1177_v14 = vmax.f32 %v702_v61, %v1686_v4  ;;  %v1343_v15 = vrot.slane %v1176_v5, %v1794_v19 }
  0xc0   :  { %v1689_v16 = vrot.slane %v711_v56, 9  ;;  %v1863_v17 = vmax.f32 %v93_v6, %v49_v7  ;;  %v1179_v18 = vmax.f32 %v703_v0, %v1688_v8  ;;  %v1351_v20 = vrot.slane %v1178_v10, %v1794_v19 }
  0xc1   :  { %v720_v21 = vcombine.high %v718_v11, %v718_v11  ;;  %v1690_v22 = vrot.slane %v719_v13, 9  ;;  %v1347_v23 = vrot.slane %v1177_v14, %v1794_v19  ;;  %v1558_v12 = vsel %vm592_vm3, %v1343_v15, %v1557_v57 }
  0xc2   :  { %v1691_v24 = vrot.slane %v718_v11, 9  ;;  %v1180_v25 = vmax.f32 %v711_v56, %v1689_v16  ;;  %v50_v26 = vpop.trf.xlu0  ;;  %v1355_v27 = vrot.slane %v1179_v18, %v1794_v19  ;;  %v1869_v30 = vmax.f32 %v47_v39, %v49_v7 }
  0xc3   :  { %v1692_v28 = vrot.slane %v720_v21, 9  ;;  %v1181_v29 = vmax.f32 %v719_v13, %v1690_v22  ;;  %v1559_v32 = vsel %vm594_vm4, %v1347_v23, %v1558_v12  ;;  %v590_v48 = vsel %vm273_vm1, %v536_v31, %v589_v55 }
  0xc4   :  { %v1182_v33 = vmax.f32 %v718_v11, %v1691_v24  ;;  %v1359_v34 = vrot.slane %v1180_v25, %v1794_v19  ;;  %v1560_v35 = vsel %vm596_vm5, %v1351_v20, %v1559_v32  ;;  %v721_v38 = vcombine.high %v1869_v30, %v1869_v30 }
  0xc5   :  { %v1183_v36 = vmax.f32 %v720_v21, %v1692_v28  ;;  %v1363_v37 = vrot.slane %v1181_v29, %v1794_v19  ;;  %v1561_v40 = vsel %vm598_vm6, %v1355_v27, %v1560_v35  ;;  %v728_v41 = vrot.slane %v1869_v30, %v1788_v9 }
  0xc6   :  { %v1367_v39 = vrot.slane %v1182_v33, %v1794_v19  ;;  %v1882_v42 = vpop.trf.xlu0  ;;  %1613 = vst.msk [vmem:[%s2264_s1 + $0x1d] sm:$0xff] %vm609_vm7, %v1561_v40  ;;  %v735_v46 = vrot.slane %v721_v38, %v1788_v9  ;;  %v96_v54 = vmax.f32 %v1854_v63, %v50_v26  ;;  %v285_v57 = vmax.f32 %v1852_v59, %v50_v26 }
  0xc7   :  { %v1371_v44 = vrot.slane %v1183_v36, %v1794_v19  ;;  %v1562_v45 = vsel %vm270_vm0, %v1363_v37, %v1359_v34  ;;  %v97_v47 = vmax.f32 %v1863_v17, %v1882_v42  ;;  %v736_v50 = vcombine.high %v728_v41, %v728_v41 }
  0xc8   :  { %v1563_v49 = vsel %vm273_vm1, %v1367_v39, %v1562_v45  ;;  %v1693_v51 = vrot.slane %v728_v41, 9  ;;  %v737_v52 = vcombine.high %v735_v46, %v735_v46  ;;  %v1695_v53 = vrot.slane %v735_v46, 9 }
  0xc9   :  { %v1564_v58 = vsel %vm276_vm2, %v1371_v44, %v1563_v49  ;;  %v1694_v60 = vrot.slane %v736_v50, 9  ;;  %v286_v62 = vmax.f32 %v1869_v30, %v1882_v42  ;;  %v1902_v2 = vsel %vm276_vm2, %v540_v43, %v590_v48 }
  0xca   :  { %v1184_v61 = vmax.f32 %v728_v41, %v1693_v51  ;;  %v52_v0 = vpop.trf.xlu0  ;;  %v1696_v1 = vrot.slane %v737_v52, 9  ;;  %v1186_v55 = vmax.f32 %v735_v46, %v1695_v53 }
  0xcb   :  { %v1904_v56 = vmax.f32 %v96_v54, %v52_v0  ;;  %v1185_v3 = vmax.f32 %v736_v50, %v1694_v60  ;;  %v289_v4 = vmax.f32 %v285_v57, %v52_v0  ;;  %v614_v59 = vmax.f32 %v50_v26, %v52_v0 }
  0xcc   :  { %v1375_v63 = vrot.slane %v1184_v61, %v1794_v19  ;;  %v1187_v5 = vmax.f32 %v737_v52, %v1696_v1  ;;  %v1383_v6 = vrot.slane %v1186_v55, %v1794_v19 }
  0xcd   :  { %v181_v7 = vrot.slane %v1904_v56, 1  ;;  %v193_v8 = vrot.slane %v1904_v56, 2  ;;  %v1379_v10 = vrot.slane %v1185_v3, %v1794_v19  ;;  %v205_v13 = vrot.slane %v1904_v56, 3 }
  0xce   :  { %v1565_v11 = vsel %vm592_vm3, %v1375_v63, %v1564_v58  ;;  %v217_v14 = vrot.slane %v1904_v56, 4  ;;  %v1914_v15 = vpop.trf.xlu0  ;;  %v1387_v16 = vrot.slane %v1187_v5, %v1794_v19  ;;  %v229_v18 = vrot.slane %v1904_v56, 5 }
  0xcf   :  { %v189_v17 = vmax.f32 %v1904_v56, %v181_v7  ;;  %v241_v20 = vrot.slane %v1904_v56, 6  ;;  %v1566_v21 = vsel %vm594_vm4, %v1379_v10, %v1565_v11  ;;  %v253_v22 = vrot.slane %v1904_v56, 7 }
  0xd0   :  { %v303_v23 = vcombine.high %v289_v4, %v289_v4  ;;  %v1629_v12 = vrot.slane %v289_v4, 9  ;;  %v1567_v24 = vsel %vm596_vm5, %v1383_v6, %v1566_v21  ;;  %v1645_v26 = vrot.slane %v289_v4, 10 }
  0xd1   :  { %v201_v25 = vmax.f32 %v189_v17, %v193_v8  ;;  %v1661_v27 = vrot.slane %v289_v4, 11  ;;  %v1568_v28 = vsel %vm598_vm6, %v1387_v16, %v1567_v24  ;;  %v738_v35 = vcombine.high %v614_v59, %v614_v59 }
  0xd2   :  { %v1630_v29 = vrot.slane %v303_v23, 9  ;;  %v369_v30 = vmax.f32 %v289_v4, %v1629_v12  ;;  %v1646_v31 = vrot.slane %v303_v23, 10  ;;  %v1924_v32 = vpop.trf.xlu0  ;;  %1614 = vst.msk [vmem:[%s2264_s1 + $0x25] sm:$0xff] %vm609_vm7, %v1568_v28  ;;  %v1662_v34 = vrot.slane %v303_v23, 11 }
  0xd3   :  { %v213_v33 = vmax.f32 %v201_v25, %v205_v13  ;;  %v745_v36 = vrot.slane %v614_v59, %v1788_v9  ;;  %v1932_v40 = vmax.f32 %v97_v47, %v1914_v15  ;;  %v1935_v39 = vmax.f32 %v286_v62, %v1914_v15 }
  0xd4   :  { %v370_v37 = vmax.f32 %v303_v23, %v1630_v29  ;;  %v433_v38 = vmax.f32 %v369_v30, %v1645_v26  ;;  %v752_v43 = vrot.slane %v738_v35, %v1788_v9  ;;  %v615_v28 = vmax.f32 %v1882_v42, %v1914_v15 }
  0xd5   :  { %v225_v41 = vmax.f32 %v213_v33, %v217_v14  ;;  %v753_v44 = vcombine.high %v745_v36, %v745_v36  ;;  %v1697_v45 = vrot.slane %v745_v36, 9  ;;  %v182_v49 = vrot.slane %v1932_v40, 1 }
  0xd6   :  { %v434_v46 = vmax.f32 %v370_v37, %v1646_v31  ;;  %v497_v48 = vmax.f32 %v433_v38, %v1661_v27  ;;  %v194_v50 = vrot.slane %v1932_v40, 2  ;;  %v1940_v51 = vpop.trf.xlu0  ;;  %v754_v53 = vcombine.high %v752_v43, %v752_v43 }
  0xd7   :  { %v237_v52 = vmax.f32 %v225_v41, %v229_v18  ;;  %v1698_v47 = vrot.slane %v753_v44, 9  ;;  %v1699_v54 = vrot.slane %v752_v43, 9  ;;  %v1188_v60 = vmax.f32 %v745_v36, %v1697_v45 }
  0xd8   :  { %v498_v57 = vmax.f32 %v434_v46, %v1662_v34  ;;  %v544_v58 = vrot.slane %v497_v48, %v1794_v19  ;;  %v190_v61 = vmax.f32 %v1932_v40, %v182_v49  ;;  %v1700_v0 = vrot.slane %v754_v53, 9 }
  0xd9   :  { %v249_v62 = vmax.f32 %v237_v52, %v241_v20  ;;  %v1189_v1 = vmax.f32 %v753_v44, %v1698_v47  ;;  %v1190_v55 = vmax.f32 %v752_v43, %v1699_v54  ;;  %v1391_v4 = vrot.slane %v1188_v60, %v1794_v19 }
  0xda   :  { %v548_v3 = vrot.slane %v498_v57, %v1794_v19  ;;  %v593_v63 = vsel %vm592_vm3, %v544_v58, %v1902_v2  ;;  %v202_v59 = vmax.f32 %v190_v61, %v194_v50  ;;  %v72_v5 = vpop.trf.xlu0  ;;  %v1191_v7 = vmax.f32 %v754_v53, %v1700_v0 }
  0xdb   :  { %v1948_v6 = vmax.f32 %v249_v62, %v253_v22  ;;  %v1395_v8 = vrot.slane %v1189_v1, %v1794_v19  ;;  %v1399_v10 = vrot.slane %v1190_v55, %v1794_v19  ;;  %v206_v13 = vrot.slane %v1932_v40, 3 }
  0xdc   :  { %v595_v11 = vsel %vm594_vm4, %v548_v3, %v593_v63  ;;  %v218_v14 = vrot.slane %v1932_v40, 4  ;;  %v230_v16 = vrot.slane %v1932_v40, 5  ;;  %v1403_v2 = vrot.slane %v1191_v7, %v1794_v19 }
  0xdd   :  { %v1569_v17 = vsel %vm270_vm0, %v1395_v8, %v1391_v4  ;;  %v242_v18 = vrot.slane %v1932_v40, 6  ;;  %v254_v20 = vrot.slane %v1932_v40, 7  ;;  %v214_v22 = vmax.f32 %v202_v59, %v206_v13 }
  0xde   :  { %v1570_v21 = vsel %vm273_vm1, %v1399_v10, %v1569_v17  ;;  %v304_v23 = vcombine.high %v1935_v39, %v1935_v39  ;;  %v1631_v12 = vrot.slane %v1935_v39, 9  ;;  %v73_v24 = vpop.trf.xlu0  ;;  %v1647_v26 = vrot.slane %v1935_v39, 10 }
  0xdf   :  { %v1571_v25 = vsel %vm276_vm2, %v1403_v2, %v1570_v21  ;;  %v1663_v27 = vrot.slane %v1935_v39, 11  ;;  %v226_v29 = vmax.f32 %v214_v22, %v218_v14  ;;  %v755_v35 = vcombine.high %v615_v28, %v615_v28 }
  0xe0   :  { %v1632_v30 = vrot.slane %v304_v23, 9  ;;  %v371_v31 = vmax.f32 %v1935_v39, %v1631_v12  ;;  %v1648_v33 = vrot.slane %v304_v23, 10  ;;  %v1664_v34 = vrot.slane %v304_v23, 11 }
  0xe1   :  { %v762_v36 = vrot.slane %v615_v28, %v1788_v9  ;;  %v100_v37 = vmax.f32 %v1904_v56, %v1924_v32  ;;  %v238_v38 = vmax.f32 %v226_v29, %v230_v16  ;;  %v101_v44 = vmax.f32 %v1932_v40, %v1940_v51 }
  0xe2   :  { %v372_v41 = vmax.f32 %v304_v23, %v1632_v30  ;;  %v435_v43 = vmax.f32 %v371_v31, %v1647_v26  ;;  %v1975_v45 = vpop.trf.xlu0  ;;  %v769_v42 = vrot.slane %v755_v35, %v1788_v9  ;;  %v1981_v52 = vmax.f32 %v1924_v32, %v72_v5 }
  0xe3   :  { %v770_v15 = vcombine.high %v762_v36, %v762_v36  ;;  %v1701_v39 = vrot.slane %v762_v36, 9  ;;  %v1978_v46 = vmax.f32 %v100_v37, %v72_v5  ;;  %v250_v48 = vmax.f32 %v238_v38, %v242_v18 }
  0xe4   :  { %v436_v49 = vmax.f32 %v372_v41, %v1648_v33  ;;  %v499_v50 = vmax.f32 %v435_v43, %v1663_v27  ;;  %v771_v56 = vcombine.high %v769_v42, %v769_v42  ;;  %v1703_v47 = vrot.slane %v769_v42, 9 }
  0xe5   :  { %v1702_v53 = vrot.slane %v770_v15, 9  ;;  %v1192_v54 = vmax.f32 %v762_v36, %v1701_v39  ;;  %v1983_v57 = vmax.f32 %v250_v48, %v254_v20  ;;  %v772_v60 = vcombine.high %v1981_v52, %v1981_v52 }
  0xe6   :  { %v500_v40 = vmax.f32 %v436_v49, %v1664_v34  ;;  %v552_v58 = vrot.slane %v499_v50, %v1794_v19  ;;  %v1988_v61 = vpop.trf.xlu0  ;;  %v1704_v62 = vrot.slane %v771_v56, 9  ;;  %v1194_v1 = vmax.f32 %v769_v42, %v1703_v47 }
  0xe7   :  { %v1193_v0 = vmax.f32 %v770_v15, %v1702_v53  ;;  %v1407_v32 = vrot.slane %v1192_v54, %v1794_v19  ;;  %v269_v55 = vrot.slane %v1983_v57, 7  ;;  %v779_v4 = vrot.slane %v1981_v52, %v1788_v9 }
  0xe8   :  { %v556_v3 = vrot.slane %v500_v40, %v1794_v19  ;;  %v597_v63 = vsel %vm596_vm5, %v552_v58, %v595_v11  ;;  %v1195_v59 = vmax.f32 %v771_v56, %v1704_v62  ;;  %v1415_v7 = vrot.slane %v1194_v1, %v1794_v19 }
  0xe9   :  { %v1411_v5 = vrot.slane %v1193_v0, %v1794_v19  ;;  %v1572_v8 = vsel %vm592_vm3, %v1407_v32, %v1571_v25  ;;  %v786_v13 = vrot.slane %v772_v60, %v1788_v9  ;;  %v787_v14 = vcombine.high %v779_v4, %v779_v4 }
  0xea   :  { %v599_v10 = vsel %vm598_vm6, %v556_v3, %v597_v63  ;;  %v1705_v16 = vrot.slane %v779_v4, 9  ;;  %v76_v2 = vpop.trf.xlu0  ;;  %v1419_v11 = vrot.slane %v1195_v59, %v1794_v19  ;;  %v2007_v18 = vmax.f32 %v101_v44, %v73_v24 }
  0xeb   :  { %610 = vst.msk [vmem:[%s2264_s1 + $0x5] sm:$0xff] %vm609_vm7, %v599_v10  ;;  %v1573_v17 = vsel %vm594_vm4, %v1411_v5, %v1572_v8  ;;  %v2010_v20 = vmax.f32 %v1940_v51, %v73_v24  ;;  %v788_v22 = vcombine.high %v786_v13, %v786_v13  ;;  %v1706_v23 = vrot.slane %v787_v14, 9 }
  0xec   :  { %v1574_v21 = vsel %vm596_vm5, %v1415_v7, %v1573_v17  ;;  %v1707_v12 = vrot.slane %v786_v13, 9  ;;  %v1196_v26 = vmax.f32 %v779_v4, %v1705_v16  ;;  %v104_v30 = vmax.f32 %v1978_v46, %v1975_v45 }
  0xed   :  { %v1575_v25 = vsel %vm598_vm6, %v1419_v11, %v1574_v21  ;;  %v789_v27 = vcombine.high %v2010_v20, %v2010_v20  ;;  %v796_v28 = vrot.slane %v2010_v20, %v1788_v9  ;;  %v1708_v51 = vrot.slane %v788_v22, 9 }
  0xee   :  { %1615 = vst.msk [vmem:[%s2264_s1 + $0x2d] sm:$0xff] %vm609_vm7, %v1575_v25  ;;  %v1197_v24 = vmax.f32 %v787_v14, %v1706_v23  ;;  %v1198_v29 = vmax.f32 %v786_v13, %v1707_v12  ;;  %v2024_v31 = vpop.trf.xlu0  ;;  %v1423_v33 = vrot.slane %v1196_v26, %v1794_v19  ;;  %v165_v43 = vmax.f32 %v1981_v52, %v1975_v45 }
  0xef   :  { %v803_v34 = vrot.slane %v789_v27, %v1788_v9  ;;  %v804_v35 = vcombine.high %v796_v28, %v796_v28  ;;  %v1709_v36 = vrot.slane %v796_v28, 9  ;;  %v1199_v37 = vmax.f32 %v788_v22, %v1708_v51 }
  0xf0   :  { %v1427_v38 = vrot.slane %v1197_v24, %v1794_v19  ;;  %v1431_v41 = vrot.slane %v1198_v29, %v1794_v19  ;;  %v105_v49 = vmax.f32 %v2007_v18, %v1988_v61  ;;  %v166_v50 = vmax.f32 %v2010_v20, %v1988_v61 }
  0xf1   :  { %v805_v44 = vcombine.high %v803_v34, %v803_v34  ;;  %v1710_v42 = vrot.slane %v804_v35, 9  ;;  %v1711_v15 = vrot.slane %v803_v34, 9  ;;  %v1200_v39 = vmax.f32 %v796_v28, %v1709_v36 }
  0xf2   :  { %v1435_v46 = vrot.slane %v1199_v37, %v1794_v19  ;;  %v1576_v48 = vsel %vm270_vm0, %v1427_v38, %v1423_v33  ;;  %v2038_v56 = vpop.trf.xlu0  ;;  %v2043_v60 = vmax.f32 %v104_v30, %v76_v2  ;;  %v2045_v62 = vmax.f32 %v165_v43, %v76_v2 }
  0xf3   :  { %v1577_v53 = vsel %vm273_vm1, %v1431_v41, %v1576_v48  ;;  %v1712_v47 = vrot.slane %v805_v44, 9  ;;  %v1201_v52 = vmax.f32 %v804_v35, %v1710_v42  ;;  %v1202_v54 = vmax.f32 %v803_v34, %v1711_v15 }
  0xf4   :  { %v1578_v40 = vsel %vm276_vm2, %v1435_v46, %v1577_v53  ;;  %v1439_v58 = vrot.slane %v1200_v39, %v1794_v19  ;;  %v616_v3 = vmax.f32 %v1975_v45, %v76_v2  ;;  %v305_v4 = vcombine.high %v2045_v62, %v2045_v62 }
  0xf5   :  { %v1203_v0 = vmax.f32 %v805_v44, %v1712_v47  ;;  %v1443_v1 = vrot.slane %v1201_v52, %v1794_v19  ;;  %v1447_v32 = vrot.slane %v1202_v54, %v1794_v19  ;;  %v1633_v59 = vrot.slane %v2045_v62, 9 }
  0xf6   :  { %v1579_v63 = vsel %vm592_vm3, %v1439_v58, %v1578_v40  ;;  %v1649_v5 = vrot.slane %v2045_v62, 10  ;;  %v2055_v7 = vpop.trf.xlu0  ;;  %v1665_v13 = vrot.slane %v2045_v62, 11  ;;  %v806_v14 = vcombine.high %v616_v3, %v616_v3 }
  0xf7   :  { %v1451_v8 = vrot.slane %v1203_v0, %v1794_v19  ;;  %v1580_v10 = vsel %vm594_vm4, %v1443_v1, %v1579_v63  ;;  %v1634_v16 = vrot.slane %v305_v4, 9  ;;  %v373_v2 = vmax.f32 %v2045_v62, %v1633_v59 }
  0xf8   :  { %v1581_v45 = vsel %vm596_vm5, %v1447_v32, %v1580_v10  ;;  %v1650_v11 = vrot.slane %v305_v4, 10  ;;  %v1666_v18 = vrot.slane %v305_v4, 11  ;;  %v813_v20 = vrot.slane %v616_v3, %v1788_v9 }
  0xf9   :  { %v1582_v17 = vsel %vm598_vm6, %v1451_v8, %v1581_v45  ;;  %v820_v21 = vrot.slane %v806_v14, %v1788_v9  ;;  %v374_v22 = vmax.f32 %v305_v4, %v1634_v16  ;;  %v437_v23 = vmax.f32 %v373_v2, %v1649_v5 }
  0xfa   :  { %1616 = vst.msk [vmem:[%s2264_s1 + $0x35] sm:$0xff] %vm609_vm7, %v1582_v17  ;;  %v107_v12 = vmax.f32 %v105_v49, %v2024_v31  ;;  %v168_v25 = vmax.f32 %v166_v50, %v2024_v31  ;;  %v80_v26 = vpop.trf.xlu0  ;;  %v821_v27 = vcombine.high %v813_v20, %v813_v20  ;;  %v1713_v51 = vrot.slane %v813_v20, 9 }
  0xfb   :  { %v822_v28 = vcombine.high %v820_v21, %v820_v21  ;;  %v1715_v24 = vrot.slane %v820_v21, 9  ;;  %v438_v29 = vmax.f32 %v374_v22, %v1650_v11  ;;  %v501_v30 = vmax.f32 %v437_v23, %v1665_v13 }
  0xfc   :  { %v306_v33 = vcombine.high %v168_v25, %v168_v25  ;;  %v1635_v34 = vrot.slane %v168_v25, 9  ;;  %v1714_v35 = vrot.slane %v821_v27, 9  ;;  %v1204_v37 = vmax.f32 %v813_v20, %v1713_v51 }
  0xfd   :  { %v1716_v36 = vrot.slane %v822_v28, 9  ;;  %v1206_v38 = vmax.f32 %v820_v21, %v1715_v24  ;;  %v502_v41 = vmax.f32 %v438_v29, %v1666_v18  ;;  %v560_v43 = vrot.slane %v501_v30, %v1794_v19 }
  0xfe   :  { %v1636_v44 = vrot.slane %v306_v33, 9  ;;  %v375_v42 = vmax.f32 %v168_v25, %v1635_v34  ;;  %v1205_v15 = vmax.f32 %v821_v27, %v1714_v35  ;;  %v1455_v46 = vrot.slane %v1204_v37, %v1794_v19  ;;  %v81_v52 = vpop.trf.xlu0 }
  0xff   :  { %v1207_v39 = vmax.f32 %v822_v28, %v1716_v36  ;;  %v1463_v48 = vrot.slane %v1206_v38, %v1794_v19  ;;  %v564_v49 = vrot.slane %v502_v41, %v1794_v19  ;;  %v1651_v53 = vrot.slane %v168_v25, 10 }
 0x100   :  { %v376_v50 = vmax.f32 %v306_v33, %v1636_v44  ;;  %v1652_v47 = vrot.slane %v306_v33, 10  ;;  %v1459_v54 = vrot.slane %v1205_v15, %v1794_v19  ;;  %v1667_v58 = vrot.slane %v168_v25, 11 }
 0x101   :  { %v1467_v40 = vrot.slane %v1207_v39, %v1794_v19  ;;  %v1668_v0 = vrot.slane %v306_v33, 11  ;;  %v600_v1 = vsel %vm270_vm0, %v564_v49, %v560_v43  ;;  %v439_v32 = vmax.f32 %v375_v42, %v1651_v53 }
 0x102   :  { %v440_v3 = vmax.f32 %v376_v50, %v1652_v47  ;;  %v617_v63 = vmax.f32 %v1988_v61, %v2024_v31  ;;  %v1583_v4 = vsel %vm270_vm0, %v1459_v54, %v1455_v46  ;;  %v108_v59 = vmax.f32 %v2043_v60, %v2038_v56  ;;  %v2101_v18 = vpop.trf.xlu0 }
 0x103   :  { %v169_v5 = vmax.f32 %v2045_v62, %v2038_v56  ;;  %v109_v8 = vmax.f32 %v107_v12, %v2055_v7  ;;  %v1584_v10 = vsel %vm273_vm1, %v1463_v48, %v1583_v4  ;;  %v503_v13 = vmax.f32 %v439_v32, %v1667_v58 }
 0x104   :  { %v2087_v14 = vmax.f32 %v440_v3, %v1668_v0  ;;  %v823_v45 = vcombine.high %v617_v63, %v617_v63  ;;  %v1585_v16 = vsel %vm276_vm2, %v1467_v40, %v1584_v10  ;;  %v830_v61 = vrot.slane %v617_v63, %v1788_v9 }
 0x105   :  { %v170_v31 = vmax.f32 %v168_v25, %v2055_v7  ;;  %v2092_v2 = vmax.f32 %v108_v59, %v80_v26  ;;  %v568_v60 = vrot.slane %v503_v13, %v1794_v19  ;;  %v2096_v11 = vmax.f32 %v169_v5, %v80_v26 }
 0x106   :  { %v837_v62 = vrot.slane %v823_v45, %v1788_v9  ;;  %v2099_v17 = vmax.f32 %v2038_v56, %v80_v26  ;;  %v838_v20 = vcombine.high %v830_v61, %v830_v61  ;;  %v1717_v21 = vrot.slane %v830_v61, 9  ;;  %v2120_v15 = vpop.trf.xlu0 }
 0x107   :  { %v2103_v22 = vmax.f32 %v109_v8, %v81_v52  ;;  %v2105_v23 = vmax.f32 %v170_v31, %v81_v52  ;;  %v601_v12 = vsel %vm273_vm1, %v568_v60, %v600_v1  ;;  %v2113_v26 = vmax.f32 %v2055_v7, %v81_v52 }
 0x108   :  { %v839_v25 = vcombine.high %v837_v62, %v837_v62  ;;  %v1719_v27 = vrot.slane %v837_v62, 9  ;;  %v840_v28 = vcombine.high %v2099_v17, %v2099_v17  ;;  %v1718_v51 = vrot.slane %v838_v20, 9 }
 0x109   :  { %v1208_v24 = vmax.f32 %v830_v61, %v1717_v21  ;;  %v847_v56 = vrot.slane %v2099_v17, %v1788_v9  ;;  %v112_v34 = vmax.f32 %v2092_v2, %v2101_v18  ;;  %v857_v47 = vcombine.high %v2113_v26, %v2113_v26 }
 0x10a   :  { %v1720_v29 = vrot.slane %v839_v25, 9  ;;  %v1210_v30 = vmax.f32 %v837_v62, %v1719_v27  ;;  %v854_v33 = vrot.slane %v840_v28, %v1788_v9  ;;  %v1209_v35 = vmax.f32 %v838_v20, %v1718_v51 }
 0x10b   :  { %v1471_v36 = vrot.slane %v1208_v24, %v1794_v19  ;;  %v855_v37 = vcombine.high %v847_v56, %v847_v56  ;;  %v1721_v38 = vrot.slane %v847_v56, 9  ;;  %v864_v58 = vrot.slane %v2113_v26, %v1788_v9 }
 0x10c   :  { %v1211_v41 = vmax.f32 %v839_v25, %v1720_v29  ;;  %v1479_v43 = vrot.slane %v1210_v30, %v1794_v19  ;;  %v856_v44 = vcombine.high %v854_v33, %v854_v33  ;;  %v1723_v42 = vrot.slane %v854_v33, 9 }
 0x10d   :  { %v1475_v7 = vrot.slane %v1209_v35, %v1794_v19  ;;  %v1586_v39 = vsel %vm592_vm3, %v1471_v36, %v1585_v16  ;;  %v1722_v46 = vrot.slane %v855_v37, 9  ;;  %v1212_v48 = vmax.f32 %v847_v56, %v1721_v38  ;;  %v84_v16 = vpop.trf.xlu0 }
 0x10e   :  { %v1483_v49 = vrot.slane %v1211_v41, %v1794_v19  ;;  %v1724_v50 = vrot.slane %v856_v44, 9  ;;  %v1214_v53 = vmax.f32 %v854_v33, %v1723_v42  ;;  %v871_v3 = vrot.slane %v857_v47, %v1788_v9 }
 0x10f   :  { %v1587_v52 = vsel %vm594_vm4, %v1475_v7, %v1586_v39  ;;  %v1213_v54 = vmax.f32 %v855_v37, %v1722_v46  ;;  %v1487_v40 = vrot.slane %v1212_v48, %v1794_v19  ;;  %v872_v59 = vcombine.high %v864_v58, %v864_v58 }
 0x110   :  { %v1588_v0 = vsel %vm596_vm5, %v1479_v43, %v1587_v52  ;;  %v1215_v1 = vmax.f32 %v856_v44, %v1724_v50  ;;  %v1495_v32 = vrot.slane %v1214_v53, %v1794_v19  ;;  %v1725_v5 = vrot.slane %v864_v58, 9 }
 0x111   :  { %v1589_v63 = vsel %vm598_vm6, %v1483_v49, %v1588_v0  ;;  %v1491_v4 = vrot.slane %v1213_v54, %v1794_v19  ;;  %v873_v10 = vcombine.high %v871_v3, %v871_v3  ;;  %v1727_v13 = vrot.slane %v871_v3, 9 }
 0x112   :  { %1617 = vst.msk [vmem:[%s2264_s1 + $0x3d] sm:$0xff] %vm609_vm7, %v1589_v63  ;;  %v1499_v8 = vrot.slane %v1215_v1, %v1794_v19  ;;  %v173_v45 = vmax.f32 %v2096_v11, %v2101_v18  ;;  %v1726_v31 = vrot.slane %v872_v59, 9  ;;  %v1216_v2 = vmax.f32 %v864_v58, %v1725_v5 }
 0x113   :  { %v1590_v61 = vsel %vm270_vm0, %v1491_v4, %v1487_v40  ;;  %v287_v60 = vmax.f32 %v2099_v17, %v2101_v18  ;;  %v1728_v20 = vrot.slane %v873_v10, 9  ;;  %v1218_v21 = vmax.f32 %v871_v3, %v1727_v13 }
 0x114   :  { %v1591_v62 = vsel %vm273_vm1, %v1495_v32, %v1590_v61  ;;  %v572_v25 = vrot.slane %v2087_v14, %v1794_v19  ;;  %v1217_v28 = vmax.f32 %v872_v59, %v1726_v31  ;;  %v1503_v11 = vrot.slane %v1216_v2, %v1794_v19 }
 0x115   :  { %v1592_v27 = vsel %vm276_vm2, %v1499_v8, %v1591_v62  ;;  %v2151_v51 = vmax.f32 %v112_v34, %v84_v16  ;;  %v1219_v24 = vmax.f32 %v873_v10, %v1728_v20  ;;  %v1511_v56 = vrot.slane %v1218_v21, %v1794_v19 }
 0x116   :  { %v2155_v29 = vsel %vm276_vm2, %v572_v25, %v601_v12  ;;  %v2157_v17 = vmax.f32 %v173_v45, %v84_v16  ;;  %v1507_v30 = vrot.slane %v1217_v28, %v1794_v19  ;;  %v1593_v33 = vsel %vm592_vm3, %v1503_v11, %v1592_v27 }
 0x117   :  { %v117_v14 = vrot.slane %v2151_v51, 1  ;;  %v120_v35 = vrot.slane %v2151_v51, 2  ;;  %v1515_v36 = vrot.slane %v1219_v24, %v1794_v19  ;;  %v123_v34 = vrot.slane %v2151_v51, 3 }
 0x118   :  { %v126_v37 = vrot.slane %v2151_v51, 4  ;;  %v129_v38 = vrot.slane %v2151_v51, 5  ;;  %v1594_v12 = vsel %vm594_vm4, %v1507_v30, %v1593_v33  ;;  %v132_v43 = vrot.slane %v2151_v51, 6 }
 0x119   :  { %v119_v41 = vmax.f32 %v2151_v51, %v117_v14  ;;  %v135_v44 = vrot.slane %v2151_v51, 7  ;;  %v1595_v42 = vsel %vm596_vm5, %v1511_v56, %v1594_v12  ;;  %v183_v7 = vrot.slane %v2157_v17, 1  ;;  %v85_v12 = vpop.trf.xlu0 }
 0x11a   :  { %v195_v39 = vrot.slane %v2157_v17, 2  ;;  %v207_v46 = vrot.slane %v2157_v17, 3  ;;  %v1596_v48 = vsel %vm598_vm6, %v1515_v36, %v1595_v42  ;;  %v219_v50 = vrot.slane %v2157_v17, 4 }
 0x11b   :  { %v122_v49 = vmax.f32 %v119_v41, %v120_v35  ;;  %v231_v53 = vrot.slane %v2157_v17, 5  ;;  %1618 = vst.msk [vmem:[%s2264_s1 + $0x45] sm:$0xff] %vm609_vm7, %v1596_v48  ;;  %v191_v47 = vmax.f32 %v2157_v17, %v183_v7  ;;  %v243_v52 = vrot.slane %v2157_v17, 6 }
 0x11c   :  { %v255_v54 = vrot.slane %v2157_v17, 7  ;;  %v291_v40 = vmax.f32 %v287_v60, %v84_v16  ;;  %v618_v0 = vmax.f32 %v2101_v18, %v84_v16  ;;  %v113_v1 = vmax.f32 %v2103_v22, %v2120_v15 }
 0x11d   :  { %v125_v58 = vmax.f32 %v122_v49, %v123_v34  ;;  %v174_v32 = vmax.f32 %v2105_v23, %v2120_v15  ;;  %v203_v3 = vmax.f32 %v191_v47, %v195_v39  ;;  %v2200_v7 = vsel %vm270_vm0, %v269_v55, %v1948_v6 }
 0x11e   :  { %v307_v63 = vcombine.high %v291_v40, %v291_v40  ;;  %v1637_v4 = vrot.slane %v291_v40, 9  ;;  %v1653_v59 = vrot.slane %v291_v40, 10  ;;  %v1669_v8 = vrot.slane %v291_v40, 11 }
 0x11f   :  { %v128_v5 = vmax.f32 %v125_v58, %v126_v37  ;;  %v874_v10 = vcombine.high %v618_v0, %v618_v0  ;;  %v881_v13 = vrot.slane %v618_v0, %v1788_v9  ;;  %v215_v45 = vmax.f32 %v203_v3, %v207_v46 }
 0x120   :  { %v1638_v61 = vrot.slane %v307_v63, 9  ;;  %v377_v31 = vmax.f32 %v291_v40, %v1637_v4  ;;  %v1654_v2 = vrot.slane %v307_v63, 10  ;;  %v1670_v16 = vrot.slane %v307_v63, 11 }
 0x121   :  { %v131_v18 = vmax.f32 %v128_v5, %v129_v38  ;;  %v888_v22 = vrot.slane %v874_v10, %v1788_v9  ;;  %v889_v60 = vcombine.high %v881_v13, %v881_v13  ;;  %v227_v62 = vmax.f32 %v215_v45, %v219_v50 }
 0x122   :  { %v378_v23 = vmax.f32 %v307_v63, %v1638_v61  ;;  %v441_v20 = vmax.f32 %v377_v31, %v1653_v59  ;;  %v1729_v21 = vrot.slane %v881_v13, 9  ;;  %v115_v50 = vmax.f32 %v113_v1, %v85_v12 }
 0x123   :  { %v890_v25 = vcombine.high %v888_v22, %v888_v22  ;;  %v1730_v27 = vrot.slane %v889_v60, 9  ;;  %v1731_v28 = vrot.slane %v888_v22, 9  ;;  %v134_v11 = vmax.f32 %v131_v18, %v132_v43 }
 0x124   :  { %v239_v51 = vmax.f32 %v227_v62, %v231_v53  ;;  %v442_v24 = vmax.f32 %v378_v23, %v1654_v2  ;;  %v505_v56 = vmax.f32 %v441_v20, %v1669_v8  ;;  %v1220_v17 = vmax.f32 %v881_v13, %v1729_v21 }
 0x125   :  { %v1732_v30 = vrot.slane %v890_v25, 9  ;;  %v1221_v33 = vmax.f32 %v889_v60, %v1730_v27  ;;  %v1222_v14 = vmax.f32 %v888_v22, %v1731_v28  ;;  %v137_v35 = vmax.f32 %v134_v11, %v135_v44 }
 0x126   :  { %v251_v36 = vmax.f32 %v239_v51, %v243_v52  ;;  %v506_v34 = vmax.f32 %v442_v24, %v1670_v16  ;;  %v576_v37 = vrot.slane %v505_v56, %v1794_v19  ;;  %v1519_v38 = vrot.slane %v1220_v17, %v1794_v19 }
 0x127   :  { %v1223_v41 = vmax.f32 %v890_v25, %v1732_v30  ;;  %v1523_v42 = vrot.slane %v1221_v33, %v1794_v19  ;;  %v1527_v43 = vrot.slane %v1222_v14, %v1794_v19  ;;  %v2209_v53 = vmax.f32 %v174_v32, %v85_v12 }
 0x128   :  { %v2202_v39 = vmax.f32 %v251_v36, %v255_v54  ;;  %v580_v44 = vrot.slane %v506_v34, %v1794_v19  ;;  %v603_v46 = vsel %vm592_vm3, %v576_v37, %v2155_v29  ;;  %v288_v6 = vmax.f32 %v2113_v26, %v2120_v15 }
 0x129   :  { %v1531_v48 = vrot.slane %v1223_v41, %v1794_v19  ;;  %v1597_v49 = vsel %vm270_vm0, %v1523_v42, %v1519_v38  ;;  %v138_v57 = vmax.f32 %v137_v35, %v115_v50  ;;  %v140_v55 = vrot.slane %v115_v50, 1 }
 0x12a   :  { %v1598_v47 = vsel %vm273_vm1, %v1527_v43, %v1597_v49  ;;  %v272_v52 = vrot.slane %v2202_v39, 6  ;;  %v604_v54 = vsel %vm594_vm4, %v580_v44, %v603_v46  ;;  %v292_v40 = vmax.f32 %v288_v6, %v85_v12 }
 0x12b   :  { %v2217_v29 = vsel %vm276_vm2, %v1531_v48, %v1598_v47  ;;  %v142_v58 = vmax.f32 %v138_v57, %v140_v55  ;;  %v143_v0 = vrot.slane %v115_v50, 2  ;;  %v146_v1 = vrot.slane %v115_v50, 3 }
 0x12c   :  { %v184_v32 = vrot.slane %v2209_v53, 1  ;;  %v149_v3 = vrot.slane %v115_v50, 4  ;;  %v152_v63 = vrot.slane %v115_v50, 5  ;;  %v155_v4 = vrot.slane %v115_v50, 6 }
 0x12d   :  { %v158_v59 = vrot.slane %v115_v50, 7  ;;  %v145_v26 = vmax.f32 %v142_v58, %v143_v0  ;;  %v196_v8 = vrot.slane %v2209_v53, 2  ;;  %v208_v10 = vrot.slane %v2209_v53, 3 }
 0x12e   :  { %v192_v5 = vmax.f32 %v2209_v53, %v184_v32  ;;  %v220_v13 = vrot.slane %v2209_v53, 4  ;;  %v232_v45 = vrot.slane %v2209_v53, 5  ;;  %v308_v61 = vcombine.high %v292_v40, %v292_v40 }
 0x12f   :  { %v1639_v31 = vrot.slane %v292_v40, 9  ;;  %v148_v2 = vmax.f32 %v145_v26, %v146_v1  ;;  %v244_v16 = vrot.slane %v2209_v53, 6  ;;  %v619_v22 = vmax.f32 %v2120_v15, %v85_v12 }
 0x130   :  { %v204_v18 = vmax.f32 %v192_v5, %v196_v8  ;;  %v256_v60 = vrot.slane %v2209_v53, 7  ;;  %v1640_v62 = vrot.slane %v308_v61, 9  ;;  %v1655_v20 = vrot.slane %v292_v40, 10 }
 0x131   :  { %v379_v23 = vmax.f32 %v292_v40, %v1639_v31  ;;  %v151_v21 = vmax.f32 %v148_v2, %v149_v3  ;;  %v891_v27 = vcombine.high %v619_v22, %v619_v22  ;;  %v898_v28 = vrot.slane %v619_v22, %v1788_v9 }
 0x132   :  { %v216_v25 = vmax.f32 %v204_v18, %v208_v10  ;;  %v380_v11 = vmax.f32 %v308_v61, %v1640_v62  ;;  %v1656_v51 = vrot.slane %v308_v61, 10  ;;  %v1671_v56 = vrot.slane %v292_v40, 11 }
 0x133   :  { %v443_v24 = vmax.f32 %v379_v23, %v1655_v20  ;;  %v154_v17 = vmax.f32 %v151_v21, %v152_v63  ;;  %v905_v33 = vrot.slane %v891_v27, %v1788_v9  ;;  %v906_v14 = vcombine.high %v898_v28, %v898_v28 }
 0x134   :  { %v228_v30 = vmax.f32 %v216_v25, %v220_v13  ;;  %v444_v15 = vmax.f32 %v380_v11, %v1656_v51  ;;  %v1672_v35 = vrot.slane %v308_v61, 11  ;;  %v1733_v34 = vrot.slane %v898_v28, 9 }
 0x135   :  { %v507_v36 = vmax.f32 %v443_v24, %v1671_v56  ;;  %v157_v37 = vmax.f32 %v154_v17, %v155_v4  ;;  %v907_v12 = vcombine.high %v905_v33, %v905_v33  ;;  %v1734_v41 = vrot.slane %v906_v14, 9 }
 0x136   :  { %v240_v38 = vmax.f32 %v228_v30, %v232_v45  ;;  %v508_v42 = vmax.f32 %v444_v15, %v1672_v35  ;;  %v1735_v44 = vrot.slane %v905_v33, 9  ;;  %v1224_v46 = vmax.f32 %v898_v28, %v1733_v34 }
 0x137   :  { %v584_v43 = vrot.slane %v507_v36, %v1794_v19  ;;  %v160_v48 = vmax.f32 %v157_v37, %v158_v59  ;;  %v1736_v50 = vrot.slane %v907_v12, 9  ;;  %v1225_v53 = vmax.f32 %v906_v14, %v1734_v41 }
 0x138   :  { %v252_v49 = vmax.f32 %v240_v38, %v244_v16  ;;  %v588_v9 = vrot.slane %v508_v42, %v1794_v19  ;;  %v1226_v6 = vmax.f32 %v905_v33, %v1735_v44  ;;  %v1535_v57 = vrot.slane %v1224_v46, %v1794_v19 }
 0x139   :  { %v605_v47 = vsel %vm596_vm5, %v584_v43, %v604_v54  ;;  %162 = vst.msk [vmem:[%s2264_s1] sm:$0x1] %vm161_vm8, %v160_v48  ;;  %v1227_v40 = vmax.f32 %v907_v12, %v1736_v50  ;;  %v1539_v58 = vrot.slane %v1225_v53, %v1794_v19  ;;  %v274_v4 = vsel %vm273_vm1, %v272_v52, %v2200_v7 }
 0x13a   :  { %v264_v55 = vmax.f32 %v252_v49, %v256_v60  ;;  %v606_v0 = vsel %vm598_vm6, %v588_v9, %v605_v47  ;;  %v1543_v1 = vrot.slane %v1226_v6, %v1794_v19  ;;  %v1600_v32 = vsel %vm592_vm3, %v1535_v57, %v2217_v29 }
 0x13b   :  { %611 = vst.msk [vmem:[%s2264_s1 + $0xd] sm:$0xff] %vm609_vm7, %v606_v0  ;;  %v1547_v3 = vrot.slane %v1227_v40, %v1794_v19  ;;  %v1601_v63 = vsel %vm594_vm4, %v1539_v58, %v1600_v32 }
 0x13c   :  { %v275_v54 = vrot.slane %v264_v55, 5  ;;  %v1602_v59 = vsel %vm596_vm5, %v1543_v1, %v1601_v63 }
 0x13d   :  { %v1603_v26 = vsel %vm598_vm6, %v1547_v3, %v1602_v59 }
 0x13e   :  { %v277_v29 = vsel %vm276_vm2, %v275_v54, %v274_v4  ;;  %1619 = vst.msk [vmem:[%s2264_s1 + $0x4d] sm:$0xff] %vm609_vm7, %v1603_v26 }
 0x13f   :  { %280 = vst.msk [vmem:[%s2264_s1 + $0x1] sm:$0xf] %vm279_vm9, %v277_v29 }
 0x140   :  { %1624 = vsyncpa [#allocation3], 1 }

</bundles_post_ra>
